<compile_context>
chip_gen: v5e
topology: v5e:2x2
jax: 0.10.0
libtpu: 0.0.40
codegen_flags: <defaults>
</compile_context>

<pallas_src>
import functools

import jax
import jax.numpy as jnp
from jax.experimental import pallas as pl
from jax.experimental.pallas import tpu as pltpu


def _layernorm2d_kernel(x_ref, w_ref, b_ref, o_ref, *, eps, channels):
    """One (1, C, TS) tile: per-pixel LayerNorm over the C (sublane) axis."""
    x = x_ref[0].astype(jnp.float32)                          # (C, TS)
    inv_c = 1.0 / float(channels)

    # Fused single-sweep statistics: E[x] and E[x^2] in one pass over the slab.
    s1 = jnp.sum(x, axis=0, keepdims=True)                    # (1, TS)
    s2 = jnp.sum(x * x, axis=0, keepdims=True)                # (1, TS)
    mu = s1 * inv_c
    var = jnp.maximum(s2 * inv_c - mu * mu, 0.0)              # guard cancellation
    inv_std = jax.lax.rsqrt(var + eps)                        # EUP rsqrt

    # out = weight * (x - mu) * inv_std + bias, written directly (no y slab).
    # w_ref / b_ref are (C, 1) -> broadcast along the lane (spatial) axis.
    o_ref[0] = ((x - mu) * (w_ref[...] * inv_std) + b_ref[...]).astype(o_ref.dtype)


def _vmem_budget():
    """(vmem_limit_bytes, target_block_bytes), generation-aware when possible."""
    try:
        vmem_cap = int(pltpu.get_tpu_info().vmem_capacity_bytes)
    except Exception:
        vmem_cap = 64 * 1024 * 1024  # conservative (v7x-sized) fallback
    # Scoped limit: at most half of physical VMEM, capped at 64 MiB.
    vmem_limit = min(vmem_cap // 2, 64 * 1024 * 1024)
    # Per-block byte target: 2 in + 2 out double-buffered blocks + a few f32
    # temps of the same footprint must fit comfortably under the limit.
    target_block_bytes = min(4 * 1024 * 1024, vmem_limit // 12)
    return vmem_limit, target_block_bytes


def _pick_spatial_tile(HW, C, itemsize, target_block_bytes, total_batch):
    """Lane-dense (multiple of 128) spatial tile sized by bytes."""
    ts = (target_block_bytes // (C * itemsize)) // 128 * 128
    ts = max(ts, 128)
    ts = min(ts, pl.cdiv(HW, 128) * 128)      # never bigger than needed
    # Keep enough grid steps to occupy both TensorCores on v7x.
    min_steps = 4
    while total_batch * pl.cdiv(HW, ts) < min_steps and ts > 128:
        ts = max(128, (ts // 2) // 128 * 128)
    return ts


def layernorm2d_pallas(x_nchw, weight, bias, eps=1e-6):
    """LayerNorm2d forward.  x_nchw: (N, C, H, W).  Returns (N, C, H, W)."""
    N, C, H, W = x_nchw.shape
    HW = H * W

    # Flatten spatial dims (contiguous in NCHW => no data movement, no pad).
    x3 = x_nchw.reshape(N, C, HW)

    itemsize = jnp.dtype(x_nchw.dtype).itemsize
    vmem_limit, target_block_bytes = _vmem_budget()
    TS = _pick_spatial_tile(HW, C, itemsize, target_block_bytes, N)
    num_spatial_tiles = pl.cdiv(HW, TS)

    w2 = weight.reshape(C, 1).astype(jnp.float32)
    b2 = bias.reshape(C, 1).astype(jnp.float32)

    kernel = functools.partial(_layernorm2d_kernel, eps=float(eps), channels=C)

    out = pl.pallas_call(
        kernel,
        out_shape=jax.ShapeDtypeStruct((N, C, HW), x_nchw.dtype),
        grid_spec=pltpu.PrefetchScalarGridSpec(
            num_scalar_prefetch=0,
            grid=(N, num_spatial_tiles),
            in_specs=[
                pl.BlockSpec((1, C, TS), lambda n, s: (n, 0, s)),   # x tile
                pl.BlockSpec((C, 1), lambda n, s: (0, 0)),          # weight
                pl.BlockSpec((C, 1), lambda n, s: (0, 0)),          # bias
            ],
            out_specs=pl.BlockSpec((1, C, TS), lambda n, s: (n, 0, s)),
        ),
        compiler_params=pltpu.CompilerParams(
            dimension_semantics=("parallel", "parallel"),
            vmem_limit_bytes=vmem_limit,
        ),
    )(x3, w2, b2)

    return out.reshape(N, C, H, W)


def _reference(x, weight, bias, eps=1e-6):
    """Plain-JAX reference matching the PyTorch LayerNormFunction.forward."""
    C = x.shape[1]
    mu = jnp.mean(x, axis=1, keepdims=True)
    var = jnp.mean((x - mu) ** 2, axis=1, keepdims=True)
    y = (x - mu) / jnp.sqrt(var + eps)
    return weight.reshape(1, C, 1, 1) * y + bias.reshape(1, C, 1, 1)


if __name__ == "__main__":
    key = jax.random.PRNGKey(0)
    kx, kw, kb = jax.random.split(key, 3)

    N, C, H, W = 2, 4, 16, 16
    x = jax.random.normal(kx, (N, C, H, W), jnp.float32)
    # Module default init is weight=1, bias=0; perturb so the affine part is
    # actually exercised by the correctness check.
    weight = 1.0 + 0.1 * jax.random.normal(kw, (C,), jnp.float32)
    bias = 0.1 * jax.random.normal(kb, (C,), jnp.float32)

    out = jax.block_until_ready(layernorm2d_pallas(x, weight, bias, eps=1e-6))
    ref = jax.block_until_ready(_reference(x, weight, bias, eps=1e-6))

    assert out.shape == (N, C, H, W)
    assert jnp.allclose(out, ref, rtol=1e-4, atol=1e-5), (
        float(jnp.max(jnp.abs(out - ref))))

    print("KERNEL_OK")
</pallas_src>

<mosaic_0001>
module attributes {stable_mosaic.version = 11 : i64} {
  func.func @_layernorm2d_kernel(%arg0: i32, %arg1: i32, %arg2: memref<1x4x128xf32, #tpu.memory_space<vmem>>, %arg3: memref<4x1xf32, #tpu.memory_space<vmem>>, %arg4: memref<4x1xf32, #tpu.memory_space<vmem>>, %arg5: memref<1x4x128xf32, #tpu.memory_space<vmem>>) attributes {dimension_semantics = [#tpu.dimension_semantics<parallel>, #tpu.dimension_semantics<parallel>], iteration_bounds = array<i64: 2, 2>, scalar_prefetch = 0 : i64, scratch_operands = 0 : i64, tpu.core_type = #tpu.core_type<tc>, window_params = [{transform_indices = @transform_0, window_bounds = array<i64: 1, 4, 128>}, {pipeline_mode = #tpu.pipeline_mode<synchronous>, transform_indices = @transform_1, window_bounds = array<i64: 4, 1>}, {pipeline_mode = #tpu.pipeline_mode<synchronous>, transform_indices = @transform_2, window_bounds = array<i64: 4, 1>}, {transform_indices = @transform_3, window_bounds = array<i64: 1, 4, 128>}]} {
    %c0 = arith.constant 0 : index
    %c0_0 = arith.constant 0 : index
    %c0_1 = arith.constant 0 : index
    %0 = vector.load %arg2[%c0, %c0_0, %c0_1] : memref<1x4x128xf32, #tpu.memory_space<vmem>>, vector<1x4x128xf32>
    %1 = vector.shape_cast %0 : vector<1x4x128xf32> to vector<4x128xf32>
    %cst = arith.constant dense<0.000000e+00> : vector<128xf32>
    %2 = vector.multi_reduction <add>, %1, %cst [0] : vector<4x128xf32> to vector<128xf32>
    %3 = vector.shape_cast %2 : vector<128xf32> to vector<1x128xf32>
    %4 = arith.mulf %1, %1 : vector<4x128xf32>
    %cst_2 = arith.constant dense<0.000000e+00> : vector<128xf32>
    %5 = vector.multi_reduction <add>, %4, %cst_2 [0] : vector<4x128xf32> to vector<128xf32>
    %6 = vector.shape_cast %5 : vector<128xf32> to vector<1x128xf32>
    %cst_3 = arith.constant 2.500000e-01 : f32
    %7 = vector.broadcast %cst_3 : f32 to vector<1x128xf32>
    %8 = arith.mulf %3, %7 : vector<1x128xf32>
    %cst_4 = arith.constant 2.500000e-01 : f32
    %9 = vector.broadcast %cst_4 : f32 to vector<1x128xf32>
    %10 = arith.mulf %6, %9 : vector<1x128xf32>
    %11 = arith.mulf %8, %8 : vector<1x128xf32>
    %12 = arith.subf %10, %11 : vector<1x128xf32>
    %cst_5 = arith.constant 0.000000e+00 : f32
    %13 = vector.broadcast %cst_5 : f32 to vector<1x128xf32>
    %14 = arith.maximumf %12, %13 : vector<1x128xf32>
    %cst_6 = arith.constant 9.99999997E-7 : f32
    %15 = vector.broadcast %cst_6 : f32 to vector<1x128xf32>
    %16 = arith.addf %14, %15 : vector<1x128xf32>
    %17 = math.rsqrt %16 : vector<1x128xf32>
    %18 = vector.broadcast %8 : vector<1x128xf32> to vector<4x128xf32>
    %19 = arith.subf %1, %18 : vector<4x128xf32>
    %c0_7 = arith.constant 0 : index
    %c0_8 = arith.constant 0 : index
    %20 = vector.load %arg3[%c0_7, %c0_8] : memref<4x1xf32, #tpu.memory_space<vmem>>, vector<4x1xf32>
    %21 = vector.broadcast %20 : vector<4x1xf32> to vector<4x128xf32>
    %22 = vector.broadcast %17 : vector<1x128xf32> to vector<4x128xf32>
    %23 = arith.mulf %21, %22 : vector<4x128xf32>
    %24 = arith.mulf %19, %23 : vector<4x128xf32>
    %c0_9 = arith.constant 0 : index
    %c0_10 = arith.constant 0 : index
    %25 = vector.load %arg4[%c0_9, %c0_10] : memref<4x1xf32, #tpu.memory_space<vmem>>, vector<4x1xf32>
    %26 = vector.broadcast %25 : vector<4x1xf32> to vector<4x128xf32>
    %27 = arith.addf %24, %26 : vector<4x128xf32>
    %c0_11 = arith.constant 0 : index
    %c0_12 = arith.constant 0 : index
    %c0_13 = arith.constant 0 : index
    %28 = vector.load %arg5[%c0_11, %c0_12, %c0_13] : memref<1x4x128xf32, #tpu.memory_space<vmem>>, vector<1x4x128xf32>
    %29 = vector.shape_cast %28 : vector<1x4x128xf32> to vector<4x128xf32>
    %30 = vector.shape_cast %27 : vector<4x128xf32> to vector<1x4x128xf32>
    tpu.vector_store %arg5[%c0_11, %c0_12, %c0_13], %30 {strides = array<i32>} : memref<1x4x128xf32, #tpu.memory_space<vmem>>, vector<1x4x128xf32>,
    return
  }
  func.func @transform_0(%arg0: i32, %arg1: i32) -> (i32, i32, i32) {
    %c0_i32 = arith.constant 0 : i32
    %c0_i32_0 = arith.constant 0 : i32
    return %arg0, %c0_i32, %arg1 : i32, i32, i32
  }
  func.func @transform_1(%arg0: i32, %arg1: i32) -> (i32, i32) {
    %c0_i32 = arith.constant 0 : i32
    %c0_i32_0 = arith.constant 0 : i32
    %c0_i32_1 = arith.constant 0 : i32
    return %c0_i32, %c0_i32_0 : i32, i32
  }
  func.func @transform_2(%arg0: i32, %arg1: i32) -> (i32, i32) {
    %c0_i32 = arith.constant 0 : i32
    %c0_i32_0 = arith.constant 0 : i32
    %c0_i32_1 = arith.constant 0 : i32
    return %c0_i32, %c0_i32_0 : i32, i32
  }
  func.func @transform_3(%arg0: i32, %arg1: i32) -> (i32, i32, i32) {
    %c0_i32 = arith.constant 0 : i32
    %c0_i32_0 = arith.constant 0 : i32
    return %arg0, %c0_i32, %arg1 : i32, i32, i32
  }
}

</mosaic_0001>

<bundles_post_ra>
// kernel: tpu_custom_call.1
= control target key start
LH: loop header
LB: loop body
LE: loop exit
PB: predicated region body
PF: predicated region fallthrough
CT: control target
= control target key end

     0   :  { %8 = vsyncpa [#allocation3], 0  ;;  %s759_s0 = inlined_call_operand.hbm [shape: f32[2,4,256], index: 0, kind: input, shape index: {}]   ;;  %s760_s1 = inlined_call_operand.vmem [shape: f32[4,1], index: 1, kind: input, shape index: {}]   ;;  %s761_s2 = inlined_call_operand.vmem [shape: f32[4,1], index: 2, kind: input, shape index: {}]   ;;  %s762_s3 = inlined_call_operand.hbm [shape: f32[2,4,256], index: 3, kind: output, shape index: {}]  }
   0x1   :  { %10 = vsyncpa [#allocation3 + $0x1], 0 }
   0x2   :  { %11 = vsyncpa [#allocation4], 0 }
   0x3   :  { %13 = vsyncpa [#allocation4 + $0x1], 0  ;;  %s607_s12 = smov 0   ;;  %s609_s13 = smov 0  }
   0x4   :  { %s611_s14 = smov 0   ;;  %s613_s15 = smov 0  }
   0x5   :  { %s615_s16 = smov 0   ;;  %s617_s17 = smov 0  }
   0x6   :  { %s619_s18 = smov 0   ;;  %s621_s19 = smov 0  }
   0x7 LB: > { %s359_s20 = sadd.s32 4294967295, %s584_s19   ;;  %s360_s21 = sadd.s32 4294967294, %s584_s19   ;;  %s584_s19 = sphi %s621_s19, %s19_s19   ;;  %s580_s18 = sphi %s619_s18, %s776_s18   ;;  %s576_s17 = sphi %s617_s17, %s775_s17   ;;  %s572_s16 = sphi %s615_s16, %s774_s16   ;;  %s568_s15 = sphi %s613_s15, %s773_s15   ;;  %s564_s14 = sphi %s611_s14, %s772_s14   ;;  %s560_s13 = sphi %s609_s13, %s771_s13   ;;  %s556_s12 = sphi %s607_s12, %s770_s12  }
   0x8   : > { %s28_s22 = sadd.s32 1, %s576_s17  ;;  %s31_s23 = sadd.s32 1, %s580_s18 }
   0x9   : > { %p29_p0 = scmp.ge.s32.totalorder %s28_s22, 2  ;;  %s40_s24 = sadd.s32 1, %s564_s14 }
   0xa   : > { %p47_p1 = scmp.ne.s32.totalorder %s564_s14, %s560_s13  ;;  %p48_p2 = scmp.eq.s32.totalorder %s584_s19, 0 }
   0xb   : > { %s778_s22 = smov (%p29_p0, %s28_s22), 0  ;;  %s780_s23 = smov (!%p29_p0, %s31_s23), %s580_s18 }
   0xc   : > { %s36_s25 = ssub.s32 %s576_s17, %s778_s22  ;;  %p660_p3 = por %p48_p2, %p47_p1 }
   0xd   : > { %p33_p4 = scmp.ge.s32.totalorder %s780_s23, 2  ;;  %p53_p5 = scmp.ne.s32.totalorder %s560_s13, %s556_s12 }
   0xe   : > { %p54_p6 = scmp.eq.s32.totalorder %s359_s20, 0  ;;  %p121_p7 = scmp.eq.s32.totalorder %s359_s20, 3 }
   0xf   : > { %s782_s23 = smov (%p33_p4, %s780_s23), 0  ;;  %p127_p10 = scmp.eq.s32.totalorder %s360_s21, 3 }
  0x10   : > { %765 = sst [smem:[#allocation8_spill]] %s782_s23  ;;  %p668_p8 = por %p54_p6, %p53_p5 }
  0x11   : > { %p672_p9 = por %p121_p7, %p47_p1  ;;  %s35_s29 = ssub.s32 %s580_s18, %s782_s23 }
  0x12   : > { %s37_s30 = sor.u32 %s36_s25, %s35_s29  ;;  %p678_p12 = por %p127_p10, %p53_p5 }
  0x13   : > { %p38_p11 = scmp.eq.s32.totalorder %s37_s30, 0  ;;  %p386_p13 = scmp.lt.s32.totalorder %s584_s19, 4 }
  0x14   : > { %s153_s5 = sand.u32 1, %s564_s14   ;;  %s364_s8 = sshll.u32 %s580_s18, 1 }
  0x15   : > { %s685_s6 = scalar_select %p38_p11, %s564_s14, %s40_s24  }
  0x16   : > { %s363_s7 = sshll.u32 %s153_s5, 2  ;;  %s161_s9 = sadd.s32 %s576_s17, %s364_s8 }
  0x17   : > { %s157_s10 = scalar_lea.vmem [#allocation2], %s363_s7  ;;  %s365_s20 = sshll.u32 %s161_s9, 2 }
  0x18   : > { %s167_s11 = sshll.u32 %s157_s10, 4  ;;  %s163_s29 = scalar_lea.hbm %s759_s0, %s365_s20  ;;  %s168_s11 = int_to_ptr.vmem [resolvable:$true] %s167_s11 }
  0x19   : > { %p379_p0 = pnand %p386_p13, %p660_p3  ;;  %s165_s30 = sshll.u32 %s163_s29, 4  ;;  %s166_s30 = int_to_ptr.hbm [resolvable:$true] %s165_s30 }
  0x1a   : > { %p366_p1 = scmp.ge.s32.totalorder %s584_s19, 1  ;;  %s154_s23 = scalar_lea.sflag [#allocation3], %s153_s5 }
  0x1b   : > { %381 = dma.hbm_to_vmem [thread:$0]  (!%p379_p0), %s166_s30, 64, %s168_s11, %s154_s23  }
  0x1c   : > { %p172_p2 = scmp.lt.s32.totalorder %s584_s19, 5 }
  0x1e   : > { %p173_p4 = pnand %p366_p1, %p172_p2 }
  0x1f   : > { %s697_s24 = sand.u32 (!%p173_p4), 1, %s560_s13  }
  0x20   : > { %176 = sbr.rel (%p173_p4) target bundleno = 168 (0xa8), region = 32  ;;  %s367_s7 = sshll.u32 (!%p173_p4), %s697_s24, 2 }
  0x21   : > { %s179_s8 = scalar_lea.sflag (!%p173_p4), [#allocation3], %s697_s24  ;;  %s182_s26 = scalar_lea.vmem (!%p173_p4), [#allocation2], %s367_s7 }
  0x25   : > { %547 = dma.done.wait (%p668_p8), %s179_s8, 64  }
  0x26   : > { %549 = vsyncadd (%p668_p8), %s179_s8, 4294967232  ;;  %v586_v0 = vmov 0   ;;  %v240_v1 = vld [vmem:[%s760_s1] sm:$0xf]  ;;  %vm207_vm0 = vcmask 1043456   ;;  %s370_s27 = sshll.u32 %s572_s16, 1 }
  0x27   : > { %453 = vset.pattern.permute.xlu0 %v586_v0  ;;  %v248_v2 = vld [vmem:[%s761_s2] sm:$0xf]  ;;  %s267_s11 = sadd.s32 %s568_s15, %s370_s27  ;;  %s205_s30 = scalar_lea.vmem [#allocation5], %s367_s7 }
  0x28   : > { %243 = vperm.xlu0 %453, %v240_v1   ;;  %v206_v3 = vld [vmem:[%s182_s26] sm:$0xf]  ;;  %s371_s20 = sshll.u32 %s267_s11, 2  ;;  %s271_s8 = sshll.u32 %s205_s30, 4  ;;  %s272_s8 = int_to_ptr.vmem [resolvable:$true] %s271_s8 }
  0x29   : > { %v208_v4 = vsel %vm207_vm0, %v206_v3, 0.0  ;;  %v215_v5 = vmul.f32 %v206_v3, %v206_v3  ;;  %s269_s29 = scalar_lea.hbm %s762_s3, %s371_s20  ;;  %s257_s15 = scalar_lea.sflag [#allocation4], %s697_s24 }
  0x2a   : > { %v209_v6 = vrot.slane %v208_v4, 4  ;;  %s273_s26 = sshll.u32 %s269_s29, 4  ;;  %s506_s7 = scalar_lea.hbm %s762_s3, 16  ;;  %s274_s26 = int_to_ptr.hbm [resolvable:$true] %s273_s26 }
  0x2b   : > { %v216_v7 = vsel %vm207_vm0, %v215_v5, 0.0  ;;  %s500_s16 = sshra.s32 %s274_s26, 4  ;;  %s501_s16 = int_to_ptr.hbm [resolvable:$true] %s500_s16 }
  0x2c   : > { %v210_v8 = vadd.f32 %v209_v6, %v208_v4  ;;  %v217_v9 = vrot.slane %v216_v7, 4  ;;  %s502_s23 = scalar_lea.hbm %s501_s16, 4  ;;  %p507_p7 = scmp.lt.s32.totalorder %s501_s16, %s762_s3 }
  0x2d   : > { %p503_p3 = scmp.ne.s32.totalorder %s501_s16, %s502_s23  ;;  %p508_p8 = scmp.lt.s32.totalorder %s506_s7, %s502_s23 }
  0x2e   : > { %v211_v10 = vrot.slane %v210_v8, 2  ;;  %v218_v11 = vadd.f32 %v217_v9, %v216_v7 }
  0x2f   : > { %p504_p5 = pnand %p503_p3, %p672_p9  ;;  %p509_p10 = por %p508_p8, %p507_p7 }
  0x30   : > { %251 = vperm.xlu0 %453, %v248_v2   ;;  %v212_v12 = vadd.f32 %v211_v10, %v210_v8  ;;  %v219_v13 = vrot.slane %v218_v11, 2 }
  0x31   : > { %p505_p6 = pneg %p504_p5 }
  0x32   : > { %v213_v14 = vrot.slane %v212_v12, 1  ;;  %v220_v15 = vadd.f32 %v219_v13, %v218_v11 }
  0x33   : > { %p510_p11 = pnand %p509_p10, %p505_p6 }
  0x34   : > { %v214_v16 = vadd.f32 %v213_v14, %v212_v12  ;;  %v221_v17 = vrot.slane %v220_v15, 1 }
  0x36   : > { %v222_v18 = vadd.f32 %v221_v17, %v220_v15  ;;  %v223_v19 = vmul.f32 0.25, %v214_v16 }
  0x38   : > { %v224_v20 = vmul.f32 0.25, %v222_v18  ;;  %v225_v21 = vmul.f32 %v223_v19, %v223_v19  ;;  %v239_v34 = vsub.f32 %v206_v3, %v223_v19 }
  0x3a   : > { %v226_v22 = vsub.f32 %v224_v20, %v225_v21 }
  0x3c   : > { %v227_v23 = vmax.f32 %v226_v22, 0.0 }
  0x3e   : > { %v228_v24 = vadd.f32 1e-06, %v227_v23 }
  0x40   : > { %454 = vrsqrt.f32 %v228_v24  ;;  %vm235_vm1 = vweird.f32 %v228_v24 }
  0x46   : > { %v455_v25 = vpop.eup %454 }
  0x47   : > { %v230_v26 = vmul.f32 %v455_v25, %v228_v24  ;;  %vm236_vm2 = vweird.f32 %v455_v25 }
  0x48   : > { %vm237_vm3 = vmor %vm235_vm1, %vm236_vm2 }
  0x49   : > { %v231_v27 = vmul.f32 %v455_v25, %v230_v26 }
  0x4b   : > { %v232_v28 = vmul.f32 0.5, %v231_v27 }
  0x4d   : > { %v233_v29 = vsub.f32 1.5, %v232_v28 }
  0x4f   : > { %v234_v30 = vmul.f32 %v455_v25, %v233_v29 }
  0x51   : > { %v238_v32 = vsel %vm237_vm3, %v455_v25, %v234_v30 }
  0x9a   : > { %v244_v31 = vpop.permute.xlu0 %243 }
  0x9b   : > { %v246_v33 = vmul.f32 %v244_v31, %v238_v32 }
  0x9d   : > { %v247_v35 = vmul.f32 %v246_v33, %v239_v34 }
  0xa2   : > { %v252_v36 = vpop.permute.xlu0 %251 }
  0xa3   : > { %v254_v37 = vadd.f32 %v252_v36, %v247_v35 }
  0xa5   : > { %255 = vst [vmem:[%s205_s30] sm:$0xf] %v254_v37 }
  0xa6   : > { %513 = shalt.err (!%p510_p11)
}
  0xa7   : > { %376 = dma.vmem_to_hbm [thread:$0]  (%p672_p9), %s272_s8, 64, %s274_s26, %s257_s15  }
  0xa8 PF: > { %p387_p13 = scmp.ge.s32.totalorder %s584_s19, 2  ;;  %s285_s24 = sand.u32 1, %s556_s12  }
  0xa9   : > { %s286_s11 = scalar_lea.sflag [#allocation4], %s285_s24 }
  0xaa   : > { %p383_p0 = pnand %p387_p13, %p678_p12 }
  0xac   : > { %p384_p1 = pneg %p383_p0 }
  0xae   : > { %551 = dma.done.wait (%p384_p1), %s286_s11, 64  }
  0xaf   : > { %553 = vsyncadd (%p384_p1), %s286_s11, 4294967232  ;;  %s19_s19 = sadd.s32 1, %s584_s19   ;;  %s769_s28 = sld [smem:[#allocation8_spill]] }
  0xb0   : > { %p16_p2 = scmp.ge.s32.totalorder %s19_s19, 6   ;;  %s770_s12 = smov %s560_s13 }
  0xb1   : > { %s771_s13 = smov %s564_s14  ;;  %s772_s14 = smov %s685_s6 }
  0xb2   : > { %s773_s15 = smov %s576_s17  ;;  %s774_s16 = smov %s580_s18 }
  0xb3   : > { %s775_s17 = smov %s778_s22  ;;  %18 = sbr.rel (!%p16_p2) target bundleno = 7 (0x7), region = 77 }
  0xb5   : > { %s776_s18 = smov %s769_s28 }
  0xb8   :  { %292 = vsyncpa [#allocation3], 1 }
  0xb9   :  { %294 = vsyncpa [#allocation3 + $0x1], 1 }
  0xba   :  { %295 = vsyncpa [#allocation4], 1 }
  0xbb   :  { %297 = vsyncpa [#allocation4 + $0x1], 1 }

</bundles_post_ra>
